<compile_context>
chip_gen: v6e
topology: v6e:2x2x1
jax: 0.10.0
libtpu: 0.0.40
codegen_flags: <defaults>
</compile_context>

<pallas_src>
import functools

import jax
import jax.numpy as jnp
from jax import lax
from jax.experimental import pallas as pl
from jax.experimental.pallas import tpu as pltpu


# --------------------------------------------------------------------------- #
# VMEM budgeting / tiling helpers (all trace-time Python)
# --------------------------------------------------------------------------- #
_LANE_CAP = 32768          # max lane-axis tile (elements)
_MAX_BATCH_BLOCK = 8       # max batch rows per grid step (bounds kernel unroll)


def _vmem_budgets():
    """(vmem_limit_bytes, per_buffer_budget_bytes) derived from this chip's VMEM."""
    try:
        cap = int(pltpu.get_tpu_info().vmem_capacity_bytes)
    except Exception:
        cap = 64 << 20
    limit = min((cap * 3) // 4, 96 << 20)   # ~96 MiB on v5e/v6e, ~48 MiB on v7x
    per_buf = limit // 6                    # in+out double-buffered (4 bufs) + headroom
    return limit, per_buf


def _pick_lane_tile(full, rows, esize, per_buf_bytes, cap=_LANE_CAP):
    """Largest lane tile (multiple of 128, <= cap) such that a (rows, tile) block fits
    per_buf_bytes; returns `full` if the whole axis fits (full-extent blocks are legal)."""
    max_t = max(128, ((per_buf_bytes // (esize * rows)) // 128) * 128)
    max_t = min(max_t, cap)
    return full if full <= max_t else max_t


def _pick_batch_block(n, bytes_per_unit, per_buf_bytes, max_d=_MAX_BATCH_BLOCK):
    """Largest divisor of n (<= max_d) whose block stays under per_buf_bytes."""
    best = 1
    for d in range(1, min(n, max_d) + 1):
        if n % d == 0 and d * bytes_per_unit <= per_buf_bytes:
            best = d
    return best


def _normalize_layout(E, R, HW, per_buf_bytes):
    """Lane-dense 2-D view (rows, cols) of the leftover-channel slab plus a legal
    (row_blk, col_blk) tiling. Prefers cols = 128*m with rows >= 8 so output stores
    are unmasked and vregs are sublane-full; falls back to the natural (R, HW)."""
    cols = 0
    hi = min(E // 8 if E >= 8 * 128 else E, _LANE_CAP)
    m = hi // 128
    while m >= 1:
        cand = 128 * m
        if E % cand == 0:
            cols = cand
            break
        m -= 1
    if cols == 0:                       # no 128-divisible factorization
        rows, cols = R, HW
    else:
        rows = E // cols
    col_blk = cols                      # full extent along lanes (always legal)
    max_rows = max(1, per_buf_bytes // (col_blk * 4))
    if rows <= max_rows:
        row_blk = rows                  # full extent
    else:
        row_blk = max(8, (max_rows // 8) * 8)   # multiple of 8
    return rows, cols, row_blk, col_blk


# --------------------------------------------------------------------------- #
# Kernel 1: fused sampled stats + Newton-Schulz inverse sqrt
# --------------------------------------------------------------------------- #
def stats_isqrt_kernel(x_ref, deconv_ref, offset_ref, sum_scr, gram_scr, *,
                       n_valid, eps, n_iter, needs_mask):
    """Accumulate row-sums and the (uncentered) Gram matrix of the sampled data,
    then, on the last grid step, compute deconv = isqrt(gram/n + eps*I) and
    offset = deconv @ mean1.  Only the final partial tile (if any) is masked."""
    i = pl.program_id(0)

    @pl.when(i == 0)
    def _():
        sum_scr[...] = jnp.zeros_like(sum_scr)
        gram_scr[...] = jnp.zeros_like(gram_scr)

    xt = x_ref[...].astype(jnp.float32)                       # (G, TILE)
    tile = xt.shape[-1]

    def accumulate(v):
        sum_scr[...] += jnp.sum(v, axis=-1, keepdims=True)
        # Contract last-with-last (NT matmul): no explicit v.T materialization.
        gram_scr[...] += lax.dot_general(
            v, v, dimension_numbers=(((1,), (1,)), ((), ())),
            preferred_element_type=jnp.float32)

    if needs_mask:
        last = pl.num_programs(0) - 1

        @pl.when(i != last)
        def _():
            accumulate(xt)

        @pl.when(i == last)
        def _():
            col = lax.broadcasted_iota(jnp.int32, xt.shape, 1)
            accumulate(jnp.where(col < (n_valid - i * tile), xt, 0.0))
    else:
        accumulate(xt)

    @pl.when(i == pl.num_programs(0) - 1)
    def _():
        g = gram_scr.shape[0]
        inv_n = jnp.float32(1.0 / n_valid)
        mean1 = sum_scr[...] * inv_n                           # (G, 1)
        eye = jnp.eye(g, dtype=jnp.float32)
        cov = gram_scr[...] * inv_n + jnp.float32(eps) * eye
        norm_a = jnp.sqrt(jnp.sum(cov * cov))                  # Frobenius norm (A.norm())
        Y = cov / norm_a
        Z = eye
        for _ in range(n_iter):                                # static -> unrolled
            T = 0.5 * (3.0 * eye - jnp.dot(Z, Y, preferred_element_type=jnp.float32))
            Y = jnp.dot(Y, T, preferred_element_type=jnp.float32)
            Z = jnp.dot(T, Z, preferred_element_type=jnp.float32)
        deconv = Z / jnp.sqrt(norm_a)
        deconv_ref[...] = deconv
        offset_ref[...] = jnp.dot(deconv, mean1, preferred_element_type=jnp.float32)


# --------------------------------------------------------------------------- #
# Kernel 2: whitening apply, directly on the (N, G, K) view, Nb batch rows/step
# --------------------------------------------------------------------------- #
def apply_deconv_kernel(x_ref, deconv_ref, offset_ref, out_ref):
    """out[n] = deconv @ x[n] - offset  (offset = deconv @ mean1, precomputed).

    NOTE: a partial last K tile feeds garbage tail columns through the matmul; this is
    safe only because each output column depends solely on its own input column and the
    out-of-bounds store is masked by Pallas (do not add column reductions here)."""
    w = deconv_ref[...]                                        # (G, G), input dtype
    off = offset_ref[...]                                      # (G, 1), f32
    for n in range(x_ref.shape[0]):                            # static unroll over Nb
        y = jnp.dot(w, x_ref[n], preferred_element_type=jnp.float32) - off
        out_ref[n] = y.astype(out_ref.dtype)


# --------------------------------------------------------------------------- #
# Kernel 3: standardize leftover channels (tiled, lane-dense elementwise)
# --------------------------------------------------------------------------- #
def normalize_kernel(x_ref, mean_ref, scale_ref, out_ref):
    xv = x_ref[...].astype(jnp.float32)
    out_ref[...] = ((xv - mean_ref[0, 0]) * scale_ref[0, 0]).astype(out_ref.dtype)


# --------------------------------------------------------------------------- #
# Wrapper
# --------------------------------------------------------------------------- #
def channel_deconv_forward(x, num_groups, eps=0.01, n_iter=5, sampling_stride=3):
    orig_shape = x.shape
    if x.ndim == 2:
        x = x.reshape(x.shape[0], x.shape[1], 1, 1)
    N, C, H, W = x.shape
    G = num_groups
    c = (C // G) * G
    assert c > 0, "num_groups should be set smaller"
    Cg = c // G
    K = Cg * H * W
    dtype = x.dtype
    esize = dtype.itemsize

    vmem_limit, per_buf = _vmem_budgets()

    # ---- sampled statistics input, exactly the PyTorch sampling pattern ----
    # (only the small sampled slice ~L/stride^2 is materialized)
    do_sample = sampling_stride > 1 and H >= sampling_stride and W >= sampling_stride
    stride = sampling_stride ** 2
    x1_s = jnp.transpose(x[:, :c], (1, 0, 2, 3)).reshape(G, -1)
    if do_sample:
        x1_s = x1_s[:, ::stride]
    Ls = x1_s.shape[1]

    # ---- kernel 1: fused stats + Newton-Schulz -> deconv, offset ----
    tile_s = _pick_lane_tile(Ls, G, 4, per_buf // 2)           # f32 accumulation path
    needs_mask = (Ls % tile_s) != 0
    deconv, offset = pl.pallas_call(
        functools.partial(stats_isqrt_kernel, n_valid=Ls, eps=eps,
                          n_iter=n_iter, needs_mask=needs_mask),
        out_shape=(jax.ShapeDtypeStruct((G, G), jnp.float32),
                   jax.ShapeDtypeStruct((G, 1), jnp.float32)),
        grid=(pl.cdiv(Ls, tile_s),),
        in_specs=[pl.BlockSpec((G, tile_s), lambda i: (0, i))],
        out_specs=(pl.BlockSpec((G, G), lambda i: (0, 0)),
                   pl.BlockSpec((G, 1), lambda i: (0, 0))),
        scratch_shapes=[pltpu.VMEM((G, 1), jnp.float32),
                        pltpu.VMEM((G, G), jnp.float32)],
        compiler_params=pltpu.CompilerParams(
            dimension_semantics=("arbitrary",),      # reduction axis: must stay resident
            vmem_limit_bytes=vmem_limit),
    )(x1_s)

    # ---- kernel 2: y[n] = deconv @ x[n] - offset on the free (N, G, K) view ----
    deconv_c = deconv.astype(dtype)            # bf16 input -> bf16 MXU operand, f32 acc
    xg = x[:, :c].reshape(N, G, K)             # metadata-only reshape when c == C
    tile_k = _pick_lane_tile(K, G, esize, per_buf)
    if tile_k == K:
        nb = _pick_batch_block(N, G * K * esize, per_buf)
    else:
        nb = 1
    y1 = pl.pallas_call(
        apply_deconv_kernel,
        out_shape=jax.ShapeDtypeStruct((N, G, K), dtype),
        grid=(N // nb, pl.cdiv(K, tile_k)),
        in_specs=[pl.BlockSpec((nb, G, tile_k), lambda n, t: (n, 0, t)),
                  pl.BlockSpec((G, G), lambda n, t: (0, 0)),
                  pl.BlockSpec((G, 1), lambda n, t: (0, 0))],
        out_specs=pl.BlockSpec((nb, G, tile_k), lambda n, t: (n, 0, t)),
        compiler_params=pltpu.CompilerParams(
            dimension_semantics=("parallel", "parallel"),
            vmem_limit_bytes=vmem_limit),
    )(xg, deconv_c, offset)
    y1 = y1.reshape(N, c, H, W)                # free reshape back to NCHW

    # ---- leftover channels (c != C): standardize with sampled mean/var ----
    if c != C:
        x_rest = x[:, c:]                                       # (N, C-c, H, W)
        x_tmp = x_rest.reshape(N, -1)
        x_s = (x_tmp[:, ::stride] if do_sample else x_tmp).astype(jnp.float32)
        mean2 = jnp.mean(x_s)
        var = jnp.var(x_s, ddof=1)                              # torch.var is unbiased
        scale = lax.rsqrt(var + eps)

        E = N * (C - c) * H * W
        rows, cols, row_blk, col_blk = _normalize_layout(E, N * (C - c), H * W, per_buf)
        x2 = x_rest.reshape(rows, cols)                         # lane-dense slab
        y2 = pl.pallas_call(
            normalize_kernel,
            out_shape=jax.ShapeDtypeStruct((rows, cols), dtype),
            grid=(pl.cdiv(rows, row_blk), pl.cdiv(cols, col_blk)),
            in_specs=[pl.BlockSpec((row_blk, col_blk), lambda i, j: (i, j)),
                      pl.BlockSpec(memory_space=pltpu.MemorySpace.SMEM),
                      pl.BlockSpec(memory_space=pltpu.MemorySpace.SMEM)],
            out_specs=pl.BlockSpec((row_blk, col_blk), lambda i, j: (i, j)),
            compiler_params=pltpu.CompilerParams(
                dimension_semantics=("parallel", "parallel"),
                vmem_limit_bytes=vmem_limit),
        )(x2,
          mean2.reshape(1, 1).astype(jnp.float32),
          scale.reshape(1, 1).astype(jnp.float32))
        y2 = y2.reshape(N, C - c, H, W)
        # TODO(synk): concat is one extra HBM pass over the output; fusing both kernels
        # into a single aliased (N, C, H, W) buffer needs tile_k | K so group blocks land
        # on block boundaries of the flat output — not done here to keep index maps simple.
        out = jnp.concatenate([y1, y2], axis=1)
    else:
        out = y1

    if len(orig_shape) == 2:
        out = out.reshape(orig_shape)
    return out


# --------------------------------------------------------------------------- #
# Pure-JAX reference (mirrors the PyTorch forward in training mode)
# --------------------------------------------------------------------------- #
def channel_deconv_ref(x, num_groups, eps=0.01, n_iter=5, sampling_stride=3):
    N, C, H, W = x.shape
    G = num_groups
    c = (C // G) * G
    x1 = jnp.transpose(x[:, :c], (1, 0, 2, 3)).reshape(G, -1)
    do_sample = sampling_stride > 1 and H >= sampling_stride and W >= sampling_stride
    x1_s = x1[:, :: sampling_stride ** 2] if do_sample else x1
    mean1 = jnp.mean(x1_s, axis=-1, keepdims=True)
    x1c = x1 - mean1
    cov = x1_s @ x1_s.T / x1_s.shape[1] + eps * jnp.eye(G, dtype=x.dtype)
    normA = jnp.linalg.norm(cov)
    Y = cov / normA
    eye = jnp.eye(G, dtype=x.dtype)
    Z = eye
    for _ in range(n_iter):
        T = 0.5 * (3.0 * eye - Z @ Y)
        Y = Y @ T
        Z = T @ Z
    deconv = Z / jnp.sqrt(normA)
    y1 = (deconv @ x1c).reshape(c, N, H, W).transpose(1, 0, 2, 3)
    if c != C:
        x_tmp = x[:, c:].reshape(N, -1)
        x_s = x_tmp[:, :: sampling_stride ** 2] if do_sample else x_tmp
        mean2 = jnp.mean(x_s)
        var = jnp.var(x_s, ddof=1)
        y2 = (x[:, c:] - mean2) / jnp.sqrt(var + eps)
        y1 = jnp.concatenate([y1, y2], axis=1)
    return y1


# --------------------------------------------------------------------------- #
if __name__ == "__main__":
    key = jax.random.PRNGKey(0)
    N, C, H, W = 2, 6, 16, 16
    num_groups = 4            # -> c = 4, leftover = 2 channels (exercises both branches)

    x = jax.random.normal(key, (N, C, H, W), dtype=jnp.float32)

    out = channel_deconv_forward(x, num_groups)
    out = jax.block_until_ready(out)

    ref = jax.block_until_ready(channel_deconv_ref(x, num_groups))

    assert out.shape == (N, C, H, W), out.shape
    assert jnp.allclose(out, ref, rtol=1e-2, atol=1e-2), float(jnp.max(jnp.abs(out - ref)))

    print("KERNEL_OK")
</pallas_src>

<mosaic_0001>
module attributes {stable_mosaic.version = 11 : i64} {
  func.func @stats_isqrt_kernel(%arg0: i32, %arg1: memref<4x57xf32, #tpu.memory_space<vmem>>, %arg2: memref<4x4xf32, #tpu.memory_space<vmem>>, %arg3: memref<4x1xf32, #tpu.memory_space<vmem>>, %arg4: memref<4x1xf32, #tpu.memory_space<vmem>>, %arg5: memref<4x4xf32, #tpu.memory_space<vmem>>) attributes {dimension_semantics = [#tpu.dimension_semantics<arbitrary>], iteration_bounds = array<i64: 1>, scalar_prefetch = 0 : i64, scratch_operands = 2 : i64, tpu.core_type = #tpu.core_type<tc>, window_params = [{transform_indices = @transform_0, window_bounds = array<i64: 4, 57>}, {pipeline_mode = #tpu.pipeline_mode<synchronous>, transform_indices = @transform_1, window_bounds = array<i64: 4, 4>}, {pipeline_mode = #tpu.pipeline_mode<synchronous>, transform_indices = @transform_2, window_bounds = array<i64: 4, 1>}]} {
    %c0_i32 = arith.constant 0 : i32
    %0 = arith.cmpi eq, %arg0, %c0_i32 : i32
    %1 = arith.extui %0 : i1 to i32
    %c0_i32_0 = arith.constant 0 : i32
    %2 = arith.cmpi ne, %1, %c0_i32_0 : i32
    scf.if %2 {
      %cst_13 = arith.constant 0.000000e+00 : f32
      %16 = vector.broadcast %cst_13 : f32 to vector<4x1xf32>
      %c0_14 = arith.constant 0 : index
      %c0_15 = arith.constant 0 : index
      %17 = vector.load %arg4[%c0_14, %c0_15] : memref<4x1xf32, #tpu.memory_space<vmem>>, vector<4x1xf32>
      tpu.vector_store %arg4[%c0_14, %c0_15], %16 {strides = array<i32>} : memref<4x1xf32, #tpu.memory_space<vmem>>, vector<4x1xf32>,
      %cst_16 = arith.constant 0.000000e+00 : f32
      %18 = vector.broadcast %cst_16 : f32 to vector<4x4xf32>
      %c0_17 = arith.constant 0 : index
      %c0_18 = arith.constant 0 : index
      %19 = vector.load %arg5[%c0_17, %c0_18] : memref<4x4xf32, #tpu.memory_space<vmem>>, vector<4x4xf32>
      tpu.vector_store %arg5[%c0_17, %c0_18], %18 {strides = array<i32>} : memref<4x4xf32, #tpu.memory_space<vmem>>, vector<4x4xf32>,
    } else {
    }
    %c0 = arith.constant 0 : index
    %c0_1 = arith.constant 0 : index
    %3 = vector.load %arg1[%c0, %c0_1] : memref<4x57xf32, #tpu.memory_space<vmem>>, vector<4x57xf32>
    %c0_2 = arith.constant 0 : index
    %c0_3 = arith.constant 0 : index
    %4 = vector.load %arg4[%c0_2, %c0_3] : memref<4x1xf32, #tpu.memory_space<vmem>>, vector<4x1xf32>
    %cst = arith.constant dense<0.000000e+00> : vector<4xf32>
    %5 = vector.multi_reduction <add>, %3, %cst [1] : vector<4x57xf32> to vector<4xf32>
    %6 = vector.shape_cast %5 : vector<4xf32> to vector<4x1xf32>
    %7 = arith.addf %4, %6 : vector<4x1xf32>
    %c0_4 = arith.constant 0 : index
    %c0_5 = arith.constant 0 : index
    %8 = vector.load %arg4[%c0_4, %c0_5] : memref<4x1xf32, #tpu.memory_space<vmem>>, vector<4x1xf32>
    tpu.vector_store %arg4[%c0_4, %c0_5], %7 {strides = array<i32>} : memref<4x1xf32, #tpu.memory_space<vmem>>, vector<4x1xf32>,
    %c0_6 = arith.constant 0 : index
    %c0_7 = arith.constant 0 : index
    %9 = vector.load %arg5[%c0_6, %c0_7] : memref<4x4xf32, #tpu.memory_space<vmem>>, vector<4x4xf32>
    %cst_8 = arith.constant dense<0.000000e+00> : vector<4x4xf32>
    %10 = tpu.matmul %3, %3, %cst_8 {dimension_numbers = #tpu.dot_dimension_numbers<[1], [1], [0], [0], [0, 0, 1, 0], [], []>} : vector<4x57xf32>, vector<4x57xf32>, vector<4x4xf32> -> vector<4x4xf32>
    %11 = arith.addf %9, %10 : vector<4x4xf32>
    %c0_9 = arith.constant 0 : index
    %c0_10 = arith.constant 0 : index
    %12 = vector.load %arg5[%c0_9, %c0_10] : memref<4x4xf32, #tpu.memory_space<vmem>>, vector<4x4xf32>
    tpu.vector_store %arg5[%c0_9, %c0_10], %11 {strides = array<i32>} : memref<4x4xf32, #tpu.memory_space<vmem>>, vector<4x4xf32>,
    %c0_i32_11 = arith.constant 0 : i32
    %13 = arith.cmpi eq, %arg0, %c0_i32_11 : i32
    %14 = arith.extui %13 : i1 to i32
    %c0_i32_12 = arith.constant 0 : i32
    %15 = arith.cmpi ne, %14, %c0_i32_12 : i32
    scf.if %15 {
      %c0_13 = arith.constant 0 : index
      %c0_14 = arith.constant 0 : index
      %16 = vector.load %arg4[%c0_13, %c0_14] : memref<4x1xf32, #tpu.memory_space<vmem>>, vector<4x1xf32>
      %cst_15 = arith.constant 0.0175438598 : f32
      %17 = vector.broadcast %cst_15 : f32 to vector<4x1xf32>
      %18 = arith.mulf %16, %17 : vector<4x1xf32>
      %19 = tpu.iota {dimensions = array<i32: 0>} : vector<4x4xi32>
      %20 = tpu.iota {dimensions = array<i32: 1>} : vector<4x4xi32>
      %c0_i32_16 = arith.constant 0 : i32
      %21 = vector.broadcast %c0_i32_16 : i32 to vector<4x4xi32>
      %22 = arith.addi %19, %21 : vector<4x4xi32>
      %23 = arith.cmpi eq, %22, %20 : vector<4x4xi32>
      %24 = arith.extui %23 : vector<4x4xi1> to vector<4x4xi32>
      %25 = arith.sitofp %24 : vector<4x4xi32> to vector<4x4xf32>
      %c0_17 = arith.constant 0 : index
      %c0_18 = arith.constant 0 : index
      %26 = vector.load %arg5[%c0_17, %c0_18] : memref<4x4xf32, #tpu.memory_space<vmem>>, vector<4x4xf32>
      %cst_19 = arith.constant 0.0175438598 : f32
      %27 = vector.broadcast %cst_19 : f32 to vector<4x4xf32>
      %28 = arith.mulf %26, %27 : vector<4x4xf32>
      %cst_20 = arith.constant 0.00999999977 : f32
      %29 = vector.broadcast %cst_20 : f32 to vector<4x4xf32>
      %30 = arith.mulf %29, %25 : vector<4x4xf32>
      %31 = arith.addf %28, %30 : vector<4x4xf32>
      %32 = arith.mulf %31, %31 : vector<4x4xf32>
      %33 = vector.shape_cast %32 : vector<4x4xf32> to vector<1x4x4xf32>
      %cst_21 = arith.constant dense<0.000000e+00> : vector<1xf32>
      %34 = vector.multi_reduction <add>, %33, %cst_21 [1, 2] : vector<1x4x4xf32> to vector<1xf32>
      %35 = vector.shape_cast %34 : vector<1xf32> to vector<1x1x1xf32>
      %36 = vector.extract %35[0, 0, 0] : f32 from vector<1x1x1xf32>
      %37 = math.sqrt %36 : f32
      %38 = vector.broadcast %37 : f32 to vector<4x4xf32>
      %39 = arith.divf %31, %38 : vector<4x4xf32>
      %cst_22 = arith.constant 3.000000e+00 : f32
      %40 = vector.broadcast %cst_22 : f32 to vector<4x4xf32>
      %41 = arith.mulf %40, %25 : vector<4x4xf32>
      %cst_23 = arith.constant dense<0.000000e+00> : vector<4x4xf32>
      %42 = tpu.matmul %25, %39, %cst_23 {dimension_numbers = #tpu.dot_dimension_numbers<[1], [0], [0], [1], [0, 0, 1, 1], [], []>} : vector<4x4xf32>, vector<4x4xf32>, vector<4x4xf32> -> vector<4x4xf32>
      %43 = arith.subf %41, %42 : vector<4x4xf32>
      %cst_24 = arith.constant 5.000000e-01 : f32
      %44 = vector.broadcast %cst_24 : f32 to vector<4x4xf32>
      %45 = arith.mulf %44, %43 : vector<4x4xf32>
      %cst_25 = arith.constant dense<0.000000e+00> : vector<4x4xf32>
      %46 = tpu.matmul %39, %45, %cst_25 {dimension_numbers = #tpu.dot_dimension_numbers<[1], [0], [0], [1], [0, 0, 1, 1], [], []>} : vector<4x4xf32>, vector<4x4xf32>, vector<4x4xf32> -> vector<4x4xf32>
      %cst_26 = arith.constant dense<0.000000e+00> : vector<4x4xf32>
      %47 = tpu.matmul %45, %25, %cst_26 {dimension_numbers = #tpu.dot_dimension_numbers<[1], [0], [0], [1], [0, 0, 1, 1], [], []>} : vector<4x4xf32>, vector<4x4xf32>, vector<4x4xf32> -> vector<4x4xf32>
      %cst_27 = arith.constant 3.000000e+00 : f32
      %48 = vector.broadcast %cst_27 : f32 to vector<4x4xf32>
      %49 = arith.mulf %48, %25 : vector<4x4xf32>
      %cst_28 = arith.constant dense<0.000000e+00> : vector<4x4xf32>
      %50 = tpu.matmul %47, %46, %cst_28 {dimension_numbers = #tpu.dot_dimension_numbers<[1], [0], [0], [1], [0, 0, 1, 1], [], []>} : vector<4x4xf32>, vector<4x4xf32>, vector<4x4xf32> -> vector<4x4xf32>
      %51 = arith.subf %49, %50 : vector<4x4xf32>
      %cst_29 = arith.constant 5.000000e-01 : f32
      %52 = vector.broadcast %cst_29 : f32 to vector<4x4xf32>
      %53 = arith.mulf %52, %51 : vector<4x4xf32>
      %cst_30 = arith.constant dense<0.000000e+00> : vector<4x4xf32>
      %54 = tpu.matmul %46, %53, %cst_30 {dimension_numbers = #tpu.dot_dimension_numbers<[1], [0], [0], [1], [0, 0, 1, 1], [], []>} : vector<4x4xf32>, vector<4x4xf32>, vector<4x4xf32> -> vector<4x4xf32>
      %cst_31 = arith.constant dense<0.000000e+00> : vector<4x4xf32>
      %55 = tpu.matmul %53, %47, %cst_31 {dimension_numbers = #tpu.dot_dimension_numbers<[1], [0], [0], [1], [0, 0, 1, 1], [], []>} : vector<4x4xf32>, vector<4x4xf32>, vector<4x4xf32> -> vector<4x4xf32>
      %cst_32 = arith.constant 3.000000e+00 : f32
      %56 = vector.broadcast %cst_32 : f32 to vector<4x4xf32>
      %57 = arith.mulf %56, %25 : vector<4x4xf32>
      %cst_33 = arith.constant dense<0.000000e+00> : vector<4x4xf32>
      %58 = tpu.matmul %55, %54, %cst_33 {dimension_numbers = #tpu.dot_dimension_numbers<[1], [0], [0], [1], [0, 0, 1, 1], [], []>} : vector<4x4xf32>, vector<4x4xf32>, vector<4x4xf32> -> vector<4x4xf32>
      %59 = arith.subf %57, %58 : vector<4x4xf32>
      %cst_34 = arith.constant 5.000000e-01 : f32
      %60 = vector.broadcast %cst_34 : f32 to vector<4x4xf32>
      %61 = arith.mulf %60, %59 : vector<4x4xf32>
      %cst_35 = arith.constant dense<0.000000e+00> : vector<4x4xf32>
      %62 = tpu.matmul %54, %61, %cst_35 {dimension_numbers = #tpu.dot_dimension_numbers<[1], [0], [0], [1], [0, 0, 1, 1], [], []>} : vector<4x4xf32>, vector<4x4xf32>, vector<4x4xf32> -> vector<4x4xf32>
      %cst_36 = arith.constant dense<0.000000e+00> : vector<4x4xf32>
      %63 = tpu.matmul %61, %55, %cst_36 {dimension_numbers = #tpu.dot_dimension_numbers<[1], [0], [0], [1], [0, 0, 1, 1], [], []>} : vector<4x4xf32>, vector<4x4xf32>, vector<4x4xf32> -> vector<4x4xf32>
      %cst_37 = arith.constant 3.000000e+00 : f32
      %64 = vector.broadcast %cst_37 : f32 to vector<4x4xf32>
      %65 = arith.mulf %64, %25 : vector<4x4xf32>
      %cst_38 = arith.constant dense<0.000000e+00> : vector<4x4xf32>
      %66 = tpu.matmul %63, %62, %cst_38 {dimension_numbers = #tpu.dot_dimension_numbers<[1], [0], [0], [1], [0, 0, 1, 1], [], []>} : vector<4x4xf32>, vector<4x4xf32>, vector<4x4xf32> -> vector<4x4xf32>
      %67 = arith.subf %65, %66 : vector<4x4xf32>
      %cst_39 = arith.constant 5.000000e-01 : f32
      %68 = vector.broadcast %cst_39 : f32 to vector<4x4xf32>
      %69 = arith.mulf %68, %67 : vector<4x4xf32>
      %cst_40 = arith.constant dense<0.000000e+00> : vector<4x4xf32>
      %70 = tpu.matmul %62, %69, %cst_40 {dimension_numbers = #tpu.dot_dimension_numbers<[1], [0], [0], [1], [0, 0, 1, 1], [], []>} : vector<4x4xf32>, vector<4x4xf32>, vector<4x4xf32> -> vector<4x4xf32>
      %cst_41 = arith.constant dense<0.000000e+00> : vector<4x4xf32>
      %71 = tpu.matmul %69, %63, %cst_41 {dimension_numbers = #tpu.dot_dimension_numbers<[1], [0], [0], [1], [0, 0, 1, 1], [], []>} : vector<4x4xf32>, vector<4x4xf32>, vector<4x4xf32> -> vector<4x4xf32>
      %cst_42 = arith.constant 3.000000e+00 : f32
      %72 = vector.broadcast %cst_42 : f32 to vector<4x4xf32>
      %73 = arith.mulf %72, %25 : vector<4x4xf32>
      %cst_43 = arith.constant dense<0.000000e+00> : vector<4x4xf32>
      %74 = tpu.matmul %71, %70, %cst_43 {dimension_numbers = #tpu.dot_dimension_numbers<[1], [0], [0], [1], [0, 0, 1, 1], [], []>} : vector<4x4xf32>, vector<4x4xf32>, vector<4x4xf32> -> vector<4x4xf32>
      %75 = arith.subf %73, %74 : vector<4x4xf32>
      %cst_44 = arith.constant 5.000000e-01 : f32
      %76 = vector.broadcast %cst_44 : f32 to vector<4x4xf32>
      %77 = arith.mulf %76, %75 : vector<4x4xf32>
      %cst_45 = arith.constant dense<0.000000e+00> : vector<4x4xf32>
      %78 = tpu.matmul %77, %71, %cst_45 {dimension_numbers = #tpu.dot_dimension_numbers<[1], [0], [0], [1], [0, 0, 1, 1], [], []>} : vector<4x4xf32>, vector<4x4xf32>, vector<4x4xf32> -> vector<4x4xf32>
      %79 = math.sqrt %37 : f32
      %80 = vector.broadcast %79 : f32 to vector<4x4xf32>
      %81 = arith.divf %78, %80 : vector<4x4xf32>
      %c0_46 = arith.constant 0 : index
      %c0_47 = arith.constant 0 : index
      %82 = vector.load %arg2[%c0_46, %c0_47] : memref<4x4xf32, #tpu.memory_space<vmem>>, vector<4x4xf32>
      tpu.vector_store %arg2[%c0_46, %c0_47], %81 {strides = array<i32>} : memref<4x4xf32, #tpu.memory_space<vmem>>, vector<4x4xf32>,
      %cst_48 = arith.constant dense<0.000000e+00> : vector<4x1xf32>
      %83 = tpu.matmul %81, %18, %cst_48 {dimension_numbers = #tpu.dot_dimension_numbers<[1], [0], [0], [1], [0, 0, 1, 1], [], []>} : vector<4x4xf32>, vector<4x1xf32>, vector<4x1xf32> -> vector<4x1xf32>
      %c0_49 = arith.constant 0 : index
      %c0_50 = arith.constant 0 : index
      %84 = vector.load %arg3[%c0_49, %c0_50] : memref<4x1xf32, #tpu.memory_space<vmem>>, vector<4x1xf32>
      tpu.vector_store %arg3[%c0_49, %c0_50], %83 {strides = array<i32>} : memref<4x1xf32, #tpu.memory_space<vmem>>, vector<4x1xf32>,
    } else {
    }
    return
  }
  func.func @transform_0(%arg0: i32) -> (i32, i32) {
    %c0_i32 = arith.constant 0 : i32
    %c0_i32_0 = arith.constant 0 : i32
    return %c0_i32, %arg0 : i32, i32
  }
  func.func @transform_1(%arg0: i32) -> (i32, i32) {
    %c0_i32 = arith.constant 0 : i32
    %c0_i32_0 = arith.constant 0 : i32
    %c0_i32_1 = arith.constant 0 : i32
    return %c0_i32, %c0_i32_0 : i32, i32
  }
  func.func @transform_2(%arg0: i32) -> (i32, i32) {
    %c0_i32 = arith.constant 0 : i32
    %c0_i32_0 = arith.constant 0 : i32
    %c0_i32_1 = arith.constant 0 : i32
    return %c0_i32, %c0_i32_0 : i32, i32
  }
}

</mosaic_0001>

<bundles_post_ra>
// kernel: tpu_custom_call.1
= control target key start
LH: loop header
LB: loop body
LE: loop exit
PB: predicated region body
PF: predicated region fallthrough
CT: control target
= control target key end

     0   :  { %8 = vsyncpa [#allocation5], 0  ;;  %s1665_s0 = inlined_call_operand.hbm [shape: f32[4,57], index: 0, kind: input, shape index: {}]   ;;  %s1666_s1 = inlined_call_operand.hbm [shape: f32[4,4], index: 1, kind: output, shape index: {0}]   ;;  %s1667_s2 = inlined_call_operand.vmem [shape: f32[4,1], index: 2, kind: output, shape index: {1}]  }
   0x1   :  { %9 = vsyncpa [#allocation6], 0  ;;  %s1537_s9 = smov [#allocation4]  }
   0x2   :  { %s16_s10 = sshll.u32 %s1537_s9, 4  ;;  %s17_s10 = int_to_ptr.vmem [resolvable:$true] %s16_s10 }
   0x3   :  { %s1501_s11 = scalar_lea.vmem %s17_s10, 64  ;;  %p1506_p1 = scmp.lt.s32.totalorder %s17_s10, %s17_s10 }
   0x4   :  { %p1502_p0 = scmp.ne.s32.totalorder %s17_s10, %s1501_s11  ;;  %p1507_p2 = scmp.lt.s32.totalorder %s1501_s11, %s1501_s11 }
   0x6   :  { %p1508_p3 = por %p1507_p2, %p1506_p1 }
   0x8   :  { %p1509_p4 = pnand %p1508_p3, %p1502_p0 }
   0xa   :  { %1512 = shalt.err (!%p1509_p4)
}
   0xb   :  { %19 = dma.hbm_to_vmem [thread:$0]  %s1665_s0, 64, %s17_s10, [#allocation5]  }
   0xc   :  { %1533 = dma.done.wait [#allocation5], 64  }
   0xd   :  { %1534 = vsyncadd [#allocation5], 4294967232  ;;  %vm29_vm0 = vcmask 27648   ;;  %v1538_v0 = vmov 0.0   ;;  %vm1539_vm1 = vmmov 0   ;;  %vm41_vm2 = vcmask 465920  }
   0xe   :  { %1395 = vmatprep.subr.mxu0 %v1538_v0  ;;  %1397 = vmatprep.mubr.msk.f32.mxu0 %vm1539_vm1, %v1538_v0  ;;  %30 = vst.msk [vmem:[#allocation3] sm:$0xf] %vm29_vm0, %v1538_v0  ;;  %v1567_v1 = vld [vmem:[#allocation4] sm:$0xf]  ;;  %v123_v2 = vlaneseq  ;;  %vm162_vm4 = vcmask 1043456   ;;  %vm158_vm7 = vcmask 31744  }
   0xf   :  { %1400 = vmatprep.subr.mxu1 %v1538_v0  ;;  %1402 = vmatprep.mubr.msk.f32.mxu1 %vm1539_vm1, %v1538_v0  ;;  %vm33_vm10 = vcmask 461824   ;;  %vm27_vm11 = vcmask 3072   ;;  %s1540_s16 = smov [#allocation7]  }
  0x10   :  { %1396 = vmatpush3.xpose.msk.msra.mxu0 %vm41_vm2, %v1567_v1  ;;  %v124_v4 = vshrl.u32 %v123_v2, 7  ;;  %v126_v5 = vand.u32 127, %v123_v2  ;;  %28 = vst.msk [vmem:[#allocation2] sm:$0xf] %vm27_vm11, %v1538_v0  ;;  %s1317_s17 = sshll.u32 %s1540_s16, 4  ;;  %s1318_s17 = int_to_ptr.vmem [resolvable:$true] %s1317_s17 }
  0x11   :  { %1410 = vmatprep.subr.mxu0 %v1538_v0  ;;  %s1513_s18 = scalar_lea.vmem %s1318_s17, 64  ;;  %p1518_p6 = scmp.lt.s32.totalorder %s1318_s17, %s1318_s17 }
  0x12   :  { %vm127_vm3 = vcmp.eq.s32.totalorder %v124_v4, %v126_v5  ;;  %p1514_p5 = scmp.ne.s32.totalorder %s1318_s17, %s1513_s18  ;;  %p1519_p7 = scmp.lt.s32.totalorder %s1513_s18, %s1513_s18 }
  0x13   :  { %1398 = vmatmul.mubr.msk.f32.vlgmr.msra.gmra.mxu0 %vm41_vm2, %v1567_v1  ;;  %v1332_v9 = vsel %vm127_vm3, 1.0, %v1538_v0 }
  0x14   :  { %1412 = vmatprep.mubr.msk.f32.mxu0 %vm1539_vm1, %v1538_v0  ;;  %v132_v10 = vmul.f32 0.01, %v1332_v9  ;;  %1411 = vmatpush3.msk.msra.mxu0 %vm162_vm4, %v1332_v9  ;;  %v1584_v37 = vmul.f32 3.0, %v1332_v9  ;;  %p1520_p8 = por %p1519_p7, %p1518_p6 }
  0x15   :  { %v40_v3 = vld [vmem:[#allocation3] sm:$0xf]  ;;  %1420 = vmatprep.subr.mxu0 %v1538_v0 }
  0x16   :  { %p1521_p9 = pnand %p1520_p8, %p1514_p5 }
  0xd3   :  { %v111_v6 = vpop.f32.mrf.mxu0 }
  0xd4   :  { %v115_v7 = vadd.f32 %v111_v6, %v40_v3 }
  0xd5   :  { %v1399_v8 = vpop.f32.mrf.mxu0 }
  0xd6   :  { %117 = vst.msk [vmem:[#allocation3] sm:$0xf] %vm29_vm0, %v115_v7  ;;  %v34_v8 = vsel %vm33_vm10, %v1567_v1, 0.0 }
  0xdd   :  { %v130_v11 = vld [vmem:[#allocation3] sm:$0xf] }
  0xde   :  { %v131_v12 = vmul.f32 0.01754386, %v130_v11 }
  0xe0   :  { %v133_v13 = vadd.f32 %v132_v10, %v131_v12 }
  0xe2   :  { %v134_v14 = vmul.f32 %v133_v13, %v133_v13 }
  0xe4   :  { %v135_v15 = vsel %vm29_vm0, %v134_v14, 0.0 }
  0xe5   :  { %136 = vadd.xlane.f32.xlu0 %v135_v15 }
  0xe9   :  { %35 = vadd.xlane.f32.xlu0 %v34_v8 }
 0x16e   :  { %v137_v16 = vpop.xlane.xlu0 %136 }
 0x16f   :  { %v138_v17 = vrot.slane %v137_v16, 4 }
 0x171   :  { %v139_v18 = vadd.f32 %v138_v17, %v137_v16 }
 0x172   :  { %v36_v14 = vpop.xlane.xlu0 %35 }
 0x173   :  { %v140_v19 = vrot.slane %v139_v18, 2 }
 0x175   :  { %v141_v20 = vadd.f32 %v140_v19, %v139_v18 }
 0x177   :  { %v142_v21 = vrot.slane %v141_v20, 1 }
 0x179   :  { %v143_v22 = vadd.f32 %v142_v21, %v141_v20 }
 0x17b   :  { %1475 = vpush %v143_v22 }
 0x1ac   :  { %s1476_s0 = spop %1475 }
 0x1ad   :  { %v145_v23 = vstv %s1476_s0 }
 0x1ae   :  { %1485 = vrsqrt.f32 %v145_v23  ;;  %vm148_vm5 = vcmp.eq.f32.partialorder %v145_v23, inf  ;;  %v151_v26 = vand.u32 2147483648, %v145_v23  ;;  %vm150_vm6 = vcmp.eq.f32.partialorder %v145_v23, 0.0 }
 0x1bb   :  { %v1486_v24 = vpop.eup %1485 }
 0x1bc   :  { %v147_v25 = vmul.f32 %v1486_v24, %v145_v23 }
 0x1be   :  { %v149_v27 = vsel %vm148_vm5, %v145_v23, %v147_v25 }
 0x1bf   :  { %v152_v28 = vsel %vm150_vm6, %v151_v26, %v149_v27 }
 0x1c0   :  { %1477 = vpush %v152_v28 }
 0x1f1   :  { %s1478_s14 = spop %1477 }
 0x1f2   :  { %v154_v29 = vstv %s1478_s14 }
 0x1f3   :  { %1487 = vrcp.f32 %v154_v29  ;;  %vm1224_vm8 = vcmp.eq.f32.partialorder %v154_v29, inf  ;;  %v1227_v34 = vand.u32 2147483648, %v154_v29  ;;  %vm1226_vm9 = vcmp.eq.f32.partialorder %v154_v29, 0.0 }
 0x1f4   :  { %1489 = vrsqrt.f32 %v154_v29 }
 0x200   :  { %v1488_v30 = vpop.eup %1487 }
 0x201   :  { %v1490_v31 = vpop.eup %1489  ;;  %v156_v32 = vmul.f32 %v1488_v30, %v133_v13  ;;  %v32_v13 = vld [vmem:[#allocation2] sm:$0xf] }
 0x202   :  { %v1223_v33 = vmul.f32 %v1490_v31, %v154_v29  ;;  %v37_v15 = vadd.f32 %v36_v14, %v32_v13 }
 0x203   :  { %1401 = vmatpush3.msk.msra.mxu1 %vm162_vm4, %v156_v32 }
 0x204   :  { %1403 = vmatmul.mubr.msk.f32.vlgmr.msra.gmra.mxu1 %vm158_vm7, %v1332_v9  ;;  %v1225_v35 = vsel %vm1224_vm8, %v154_v29, %v1223_v33  ;;  %1405 = vmatprep.subr.mxu1 %v1538_v0  ;;  %39 = vst.msk [vmem:[#allocation2] sm:$0xf] %vm27_vm11, %v37_v15 }
 0x205   :  { %v1228_v36 = vsel %vm1226_vm9, %v1227_v34, %v1225_v35  ;;  %1407 = vmatprep.mubr.msk.f32.mxu1 %vm1539_vm1, %v1538_v0 }
 0x206   :  { %1479 = vpush %v1228_v36 }
 0x20b   :  { %v121_v16 = vld [vmem:[#allocation2] sm:$0xf] }
 0x20c   :  { %v122_v17 = vmul.f32 0.01754386, %v121_v16 }
 0x237   :  { %s1480_s15 = spop %1479 }
 0x238   :  { %v1230_v1 = vstv %s1480_s15 }
 0x239   :  { %1491 = vrcp.f32 %v1230_v1 }
 0x2c4   :  { %v232_v38 = vpop.f32.mrf.mxu1 }
 0x2c5   :  { %v236_v39 = vsub.f32 %v1584_v37, %v232_v38 }
 0x2c6   :  { %v1404_v40 = vpop.f32.mrf.mxu1 }
 0x2c7   :  { %v237_v41 = vmul.f32 0.5, %v236_v39 }
 0x2c9   :  { %1406 = vmatpush3.msk.msra.mxu1 %vm162_vm4, %v237_v41  ;;  %1413 = vmatmul.mubr.msk.f32.vlgmr.msra.gmra.mxu0 %vm158_vm7, %v237_v41 }
 0x2ca   :  { %1408 = vmatmul.mubr.msk.f32.vlgmr.msra.gmra.mxu1 %vm158_vm7, %v156_v32  ;;  %1415 = vmatprep.subr.mxu1 %v1538_v0 }
 0x2cb   :  { %1417 = vmatprep.mubr.msk.f32.mxu1 %vm1539_vm1, %v1538_v0  ;;  %1422 = vmatprep.mubr.msk.f32.mxu0 %vm1539_vm1, %v1538_v0 }
 0x389   :  { %v383_v42 = vpop.f32.mrf.mxu0 }
 0x38a   :  { %v309_v43 = vpop.f32.mrf.mxu1 }
 0x38b   :  { %v1414_v44 = vpop.f32.mrf.mxu0  ;;  %1416 = vmatpush3.msk.msra.mxu1 %vm162_vm4, %v309_v43 }
 0x38c   :  { %v1409_v45 = vpop.f32.mrf.mxu1  ;;  %1418 = vmatmul.mubr.msk.f32.vlgmr.msra.gmra.mxu1 %vm158_vm7, %v383_v42  ;;  %1425 = vmatprep.subr.mxu1 %v1538_v0 }
 0x38d   :  { %1426 = vmatpush3.msk.msra.mxu1 %vm162_vm4, %v383_v42  ;;  %1427 = vmatprep.mubr.msk.f32.mxu1 %vm1539_vm1, %v1538_v0 }
 0x38e   :  { %1435 = vmatprep.subr.mxu1 %v1538_v0 }
 0x44c   :  { %v459_v46 = vpop.f32.mrf.mxu1 }
 0x44d   :  { %v463_v47 = vsub.f32 %v1584_v37, %v459_v46 }
 0x44e   :  { %v1419_v48 = vpop.f32.mrf.mxu1 }
 0x44f   :  { %v464_v49 = vmul.f32 0.5, %v463_v47 }
 0x451   :  { %1421 = vmatpush3.msk.msra.mxu0 %vm162_vm4, %v464_v49  ;;  %1428 = vmatmul.mubr.msk.f32.vlgmr.msra.gmra.mxu1 %vm158_vm7, %v464_v49 }
 0x452   :  { %1423 = vmatmul.mubr.msk.f32.vlgmr.msra.gmra.mxu0 %vm158_vm7, %v309_v43  ;;  %1430 = vmatprep.subr.mxu0 %v1538_v0 }
 0x453   :  { %1432 = vmatprep.mubr.msk.f32.mxu0 %vm1539_vm1, %v1538_v0  ;;  %1437 = vmatprep.mubr.msk.f32.mxu1 %vm1539_vm1, %v1538_v0 }
 0x511   :  { %v610_v50 = vpop.f32.mrf.mxu1 }
 0x512   :  { %v536_v51 = vpop.f32.mrf.mxu0 }
 0x513   :  { %v1429_v52 = vpop.f32.mrf.mxu1  ;;  %1431 = vmatpush3.msk.msra.mxu0 %vm162_vm4, %v536_v51 }
 0x514   :  { %v1424_v53 = vpop.f32.mrf.mxu0  ;;  %1433 = vmatmul.mubr.msk.f32.vlgmr.msra.gmra.mxu0 %vm158_vm7, %v610_v50  ;;  %1440 = vmatprep.subr.mxu0 %v1538_v0 }
 0x515   :  { %1441 = vmatpush3.msk.msra.mxu0 %vm162_vm4, %v610_v50  ;;  %1442 = vmatprep.mubr.msk.f32.mxu0 %vm1539_vm1, %v1538_v0 }
 0x516   :  { %1450 = vmatprep.subr.mxu0 %v1538_v0 }
 0x5d4   :  { %v686_v54 = vpop.f32.mrf.mxu0 }
 0x5d5   :  { %v690_v55 = vsub.f32 %v1584_v37, %v686_v54 }
 0x5d6   :  { %v1434_v56 = vpop.f32.mrf.mxu0 }
 0x5d7   :  { %v691_v57 = vmul.f32 0.5, %v690_v55 }
 0x5d9   :  { %1436 = vmatpush3.msk.msra.mxu1 %vm162_vm4, %v691_v57  ;;  %1443 = vmatmul.mubr.msk.f32.vlgmr.msra.gmra.mxu0 %vm158_vm7, %v691_v57 }
 0x5da   :  { %1438 = vmatmul.mubr.msk.f32.vlgmr.msra.gmra.mxu1 %vm158_vm7, %v536_v51  ;;  %1445 = vmatprep.subr.mxu1 %v1538_v0 }
 0x5db   :  { %1447 = vmatprep.mubr.msk.f32.mxu1 %vm1539_vm1, %v1538_v0  ;;  %1452 = vmatprep.mubr.msk.f32.mxu0 %vm1539_vm1, %v1538_v0 }
 0x699   :  { %v837_v58 = vpop.f32.mrf.mxu0 }
 0x69a   :  { %v763_v59 = vpop.f32.mrf.mxu1 }
 0x69b   :  { %v1444_v60 = vpop.f32.mrf.mxu0  ;;  %1446 = vmatpush3.msk.msra.mxu1 %vm162_vm4, %v763_v59 }
 0x69c   :  { %v1439_v61 = vpop.f32.mrf.mxu1  ;;  %1448 = vmatmul.mubr.msk.f32.vlgmr.msra.gmra.mxu1 %vm158_vm7, %v837_v58  ;;  %1455 = vmatprep.subr.mxu1 %v1538_v0 }
 0x69d   :  { %1456 = vmatpush3.msk.msra.mxu1 %vm162_vm4, %v837_v58  ;;  %1457 = vmatprep.mubr.msk.f32.mxu1 %vm1539_vm1, %v1538_v0 }
 0x69e   :  { %1465 = vmatprep.subr.mxu1 %v1538_v0 }
 0x75c   :  { %v913_v62 = vpop.f32.mrf.mxu1 }
 0x75d   :  { %v917_v63 = vsub.f32 %v1584_v37, %v913_v62 }
 0x75e   :  { %v1449_v2 = vpop.f32.mrf.mxu1 }
 0x75f   :  { %v918_v3 = vmul.f32 0.5, %v917_v63 }
 0x761   :  { %1451 = vmatpush3.msk.msra.mxu0 %vm162_vm4, %v918_v3  ;;  %1458 = vmatmul.mubr.msk.f32.vlgmr.msra.gmra.mxu1 %vm158_vm7, %v918_v3 }
 0x762   :  { %1453 = vmatmul.mubr.msk.f32.vlgmr.msra.gmra.mxu0 %vm158_vm7, %v763_v59  ;;  %1460 = vmatprep.subr.mxu0 %v1538_v0 }
 0x763   :  { %1462 = vmatprep.mubr.msk.f32.mxu0 %vm1539_vm1, %v1538_v0  ;;  %1467 = vmatprep.mubr.msk.f32.mxu1 %vm1539_vm1, %v1538_v0 }
 0x821   :  { %v1064_v4 = vpop.f32.mrf.mxu1 }
 0x822   :  { %v990_v5 = vpop.f32.mrf.mxu0  ;;  %1466 = vmatpush3.msk.msra.mxu1 %vm162_vm4, %v1064_v4 }
 0x823   :  { %v1459_v6 = vpop.f32.mrf.mxu1  ;;  %1461 = vmatpush3.msk.msra.mxu0 %vm162_vm4, %v990_v5 }
 0x824   :  { %v1454_v7 = vpop.f32.mrf.mxu0  ;;  %1463 = vmatmul.mubr.msk.f32.vlgmr.msra.gmra.mxu0 %vm158_vm7, %v1064_v4  ;;  %1470 = vmatprep.subr.mxu0 %v1538_v0 }
 0x825   :  { %1472 = vmatprep.mubr.msk.f32.mxu0 %vm1539_vm1, %v1538_v0  ;;  %1471 = vmatpush3.msk.msra.mxu0 %vm162_vm4, %v122_v17  ;;  %v1492_v0 = vpop.eup %1491 }
 0x8e4   :  { %v1140_v9 = vpop.f32.mrf.mxu0 }
 0x8e5   :  { %v1144_v10 = vsub.f32 %v1584_v37, %v1140_v9 }
 0x8e6   :  { %v1464_v11 = vpop.f32.mrf.mxu0 }
 0x8e7   :  { %v1145_v12 = vmul.f32 0.5, %v1144_v10 }
 0x8e9   :  { %1468 = vmatmul.mubr.msk.f32.vlgmr.msra.gmra.mxu1 %vm158_vm7, %v1145_v12 }
 0x9a9   :  { %v1217_v18 = vpop.f32.mrf.mxu1 }
 0x9aa   :  { %v1232_v19 = vmul.f32 %v1492_v0, %v1217_v18 }
 0x9ab   :  { %v1469_v20 = vpop.f32.mrf.mxu1 }
 0x9ac   :  { %1233 = vst.msk [vmem:[#allocation7] sm:$0xf] %vm29_vm0, %v1232_v19  ;;  %1473 = vmatmul.mubr.msk.f32.vlgmr.msra.gmra.mxu0 %vm158_vm7, %v1232_v19 }
 0x9ad   :  { %1524 = shalt.err (!%p1521_p9)
}
 0x9ae   :  { %1320 = dma.vmem_to_hbm [thread:$0]  %s1318_s17, 64, %s1666_s1, [#allocation6]  }
 0xa6c   :  { %v1306_v21 = vpop.f32.mrf.mxu0 }
 0xa6d   :  { %1310 = vst.msk [vmem:[%s1667_s2] sm:$0xf] %vm27_vm11, %v1306_v21 }
 0xa6e   :  { %v1474_v22 = vpop.f32.mrf.mxu0 }
 0xa6f   :  { %1535 = dma.done.wait [#allocation6], 64  }
 0xa70   :  { %1536 = vsyncadd [#allocation6], 4294967232 }
 0xa71   :  { %1328 = vsyncpa [#allocation5], 1 }
 0xa72   :  { %1329 = vsyncpa [#allocation6], 1 }

</bundles_post_ra>
